<compile_context>
chip_gen: v6e
topology: v6e:2x2x1
jax: 0.10.0
libtpu: 0.0.40
codegen_flags: <defaults>
</compile_context>

<pallas_src>
import jax
import jax.numpy as jnp
from jax.experimental import pallas as pl
from jax.experimental.pallas import tpu as pltpu

KSIZES = (1, 2, 3, 4, 5)
KMAX = max(KSIZES)


def _cnn_gramer_kernel(xp_ref, w_ref, b_ref, o_ref):
    """One grid step == Bt batch elements.

    xp_ref : (Bt, L + KMAX - 1, C)  bf16  (x zero-padded along L)
    w_ref  : (KMAX, C, KMAX * H)    bf16  (tap-major; all convs concatenated
                                           along H, zero-padded for taps a
                                           conv does not have)
    b_ref  : (1, KMAX * H)          f32   (all conv biases concatenated)
    o_ref  : (Bt, 5L - 10, H)             (fused concat output)
    """
    bt, l_pad, c = xp_ref.shape
    kmax = w_ref.shape[0]
    h5 = w_ref.shape[2]
    h = o_ref.shape[2]
    l = l_pad - (kmax - 1)
    m = bt * l

    x = xp_ref[...]  # load once: (Bt, L_pad, C) bf16

    # Accumulator starts as the broadcast bias -> no epilogue add.
    acc = jnp.broadcast_to(b_ref[...], (m, h5)).astype(jnp.float32)

    # One wide MXU matmul per tap: x[:, j:j+L] @ W_cat_j, M = Bt*L, N = 5H.
    # Zero-padded weight columns contribute exactly 0 for convs lacking tap j.
    for j in range(kmax):
        xj = x[:, j:j + l, :].reshape(m, c)
        acc = acc + jnp.dot(xj, w_ref[j], preferred_element_type=jnp.float32)

    acc = acc.reshape(bt, l, h5)

    # Scatter each conv's valid rows into the fused output at static offsets
    # (0, L, 2L-1, 3L-3, 4L-6) == torch.cat order along the sequence dim.
    off = 0
    for idx, k in enumerate(KSIZES):
        l_out = l - k + 1
        o_ref[:, off:off + l_out, :] = (
            acc[:, :l_out, idx * h:(idx + 1) * h].astype(o_ref.dtype))
        off += l_out


def _pick_bt(batch, seq_len, target_m=256):
    """Largest divisor of `batch` with Bt*L close to the MXU M target."""
    want = min(batch, max(1, -(-target_m // seq_len)))
    bt = want
    while batch % bt:
        bt -= 1
    return bt


def cnn_gramer(x, weights, biases, *, compute_dtype=jnp.bfloat16):
    """x: (B, L, C) f32.  weights[i]: (k_i, C, H) tap-major.  biases[i]: (1, H)."""
    B, L, C = x.shape
    H = weights[0].shape[-1]
    L_pad = L + KMAX - 1
    out_L = sum(L - k + 1 for k in KSIZES)  # == 5L - 10

    # Pack all conv weights into one tap-major slab (KMAX, C, KMAX*H).
    w_all = jnp.zeros((KMAX, C, KMAX * H), compute_dtype)
    for idx, (k, w) in enumerate(zip(KSIZES, weights)):
        w_all = w_all.at[:k, :, idx * H:(idx + 1) * H].set(
            w.astype(compute_dtype))
    b_all = jnp.concatenate(
        [b.reshape(1, H).astype(jnp.float32) for b in biases], axis=1)

    # Zero-pad x along L so every tap shares the same M rows.
    x_pad = jnp.pad(x.astype(compute_dtype),
                    ((0, 0), (0, KMAX - 1), (0, 0)))

    Bt = _pick_bt(B, L)
    grid = (B // Bt,)

    # TODO(synk): for production-sized C (multi-thousand), add an "arbitrary"
    # K grid axis tiling C instead of keeping the whole weight slab resident
    # (v7x has only 64 MiB VMEM).
    return pl.pallas_call(
        _cnn_gramer_kernel,
        out_shape=jax.ShapeDtypeStruct((B, out_L, H), x.dtype),
        grid_spec=pltpu.PrefetchScalarGridSpec(
            num_scalar_prefetch=0,
            grid=grid,
            in_specs=[
                pl.BlockSpec((Bt, L_pad, C), lambda i: (i, 0, 0)),
                pl.BlockSpec((KMAX, C, KMAX * H), lambda i: (0, 0, 0)),
                pl.BlockSpec((1, KMAX * H), lambda i: (0, 0)),
            ],
            out_specs=pl.BlockSpec((Bt, out_L, H), lambda i: (i, 0, 0)),
        ),
        compiler_params=pltpu.CompilerParams(
            dimension_semantics=("parallel",),
            vmem_limit_bytes=64 * 1024 * 1024,
        ),
    )(x_pad, w_all, b_all)


def init_params(key, input_size, hidden_size):
    """Deterministic Conv1d-style init: U(-1/sqrt(fan_in), 1/sqrt(fan_in))."""
    weights, biases = [], []
    for k in KSIZES:
        key, wk, bk = jax.random.split(key, 3)
        fan_in = input_size * k
        bound = 1.0 / jnp.sqrt(jnp.float32(fan_in))
        # PyTorch Conv1d weight is (H, C_in, k); store tap-major (k, C_in, H)
        # so each tap is a ready-to-use (C_in, H) matmul operand.
        w = jax.random.uniform(wk, (k, input_size, hidden_size),
                               jnp.float32, -bound, bound)
        b = jax.random.uniform(bk, (1, hidden_size),
                               jnp.float32, -bound, bound)
        weights.append(w)
        biases.append(b)
    return weights, biases


def reference(x, weights, biases, compute_dtype=jnp.bfloat16):
    """Pure-JAX reference of the PyTorch forward (same bf16 operand cast)."""
    B, L, _ = x.shape
    xc = x.astype(compute_dtype)
    outs = []
    for k, w, b in zip(KSIZES, weights, biases):
        wc = w.astype(compute_dtype)
        l_out = L - k + 1
        acc = jnp.zeros((B, l_out, w.shape[-1]), jnp.float32)
        for j in range(k):
            acc = acc + jnp.einsum('blc,ch->blh',
                                   xc[:, j:j + l_out, :], wc[j],
                                   preferred_element_type=jnp.float32)
        outs.append(acc + b.reshape(1, 1, -1).astype(jnp.float32))
    return jnp.concatenate(outs, axis=1)


if __name__ == "__main__":
    B, L, INPUT_SIZE, HIDDEN_SIZE = 2, 16, 32, 32

    key = jax.random.PRNGKey(0)
    key, xk = jax.random.split(key)
    x = jax.random.normal(xk, (B, L, INPUT_SIZE), jnp.float32)

    weights, biases = init_params(key, INPUT_SIZE, HIDDEN_SIZE)

    out = cnn_gramer(x, weights, biases)
    out = jax.block_until_ready(out)

    assert out.shape == (B, 5 * L - 10, HIDDEN_SIZE), out.shape

    ref = reference(x, weights, biases)
    err = float(jnp.max(jnp.abs(out - ref)))
    assert jnp.allclose(out, ref, atol=1e-3, rtol=1e-3), err

    print("KERNEL_OK")
</pallas_src>

<mosaic_0001>
module attributes {stable_mosaic.version = 11 : i64} {
  func.func @_cnn_gramer_kernel(%arg0: i32, %arg1: memref<2x20x32xbf16, #tpu.memory_space<vmem>>, %arg2: memref<5x32x160xbf16, #tpu.memory_space<vmem>>, %arg3: memref<1x160xf32, #tpu.memory_space<vmem>>, %arg4: memref<2x70x32xf32, #tpu.memory_space<vmem>>) attributes {dimension_semantics = [#tpu.dimension_semantics<parallel>], iteration_bounds = array<i64: 1>, scalar_prefetch = 0 : i64, scratch_operands = 0 : i64, tpu.core_type = #tpu.core_type<tc>, window_params = [{transform_indices = @transform_0, window_bounds = array<i64: 2, 20, 32>}, {pipeline_mode = #tpu.pipeline_mode<synchronous>, transform_indices = @transform_1, window_bounds = array<i64: 5, 32, 160>}, {pipeline_mode = #tpu.pipeline_mode<synchronous>, transform_indices = @transform_2, window_bounds = array<i64: 1, 160>}, {transform_indices = @transform_3, window_bounds = array<i64: 2, 70, 32>}]} {
    %c0 = arith.constant 0 : index
    %c0_0 = arith.constant 0 : index
    %c0_1 = arith.constant 0 : index
    %0 = vector.load %arg1[%c0, %c0_0, %c0_1] : memref<2x20x32xbf16, #tpu.memory_space<vmem>>, vector<2x20x32xbf16>
    %c0_2 = arith.constant 0 : index
    %c0_3 = arith.constant 0 : index
    %1 = vector.load %arg3[%c0_2, %c0_3] : memref<1x160xf32, #tpu.memory_space<vmem>>, vector<1x160xf32>
    %2 = vector.shape_cast %1 : vector<1x160xf32> to vector<1x160xf32>
    %3 = vector.broadcast %2 : vector<1x160xf32> to vector<32x160xf32>
    %4 = vector.extract_strided_slice %0 {offsets = [0, 0, 0], sizes = [2, 16, 32], strides = [1, 1, 1]} : vector<2x20x32xbf16> to vector<2x16x32xbf16>
    %5 = vector.shape_cast %4 : vector<2x16x32xbf16> to vector<32x32xbf16>
    %c0_4 = arith.constant 0 : index
    %c0_5 = arith.constant 0 : index
    %c0_6 = arith.constant 0 : index
    %6 = vector.load %arg2[%c0_4, %c0_5, %c0_6] : memref<5x32x160xbf16, #tpu.memory_space<vmem>>, vector<1x32x160xbf16>
    %7 = vector.shape_cast %6 : vector<1x32x160xbf16> to vector<32x160xbf16>
    %cst = arith.constant dense<0.000000e+00> : vector<32x160xf32>
    %8 = tpu.matmul %5, %7, %cst {dimension_numbers = #tpu.dot_dimension_numbers<[1], [0], [0], [1], [0, 0, 1, 1], [], []>} : vector<32x32xbf16>, vector<32x160xbf16>, vector<32x160xf32> -> vector<32x160xf32>
    %9 = arith.addf %3, %8 : vector<32x160xf32>
    %10 = vector.extract_strided_slice %0 {offsets = [0, 1, 0], sizes = [2, 16, 32], strides = [1, 1, 1]} : vector<2x20x32xbf16> to vector<2x16x32xbf16>
    %11 = vector.shape_cast %10 : vector<2x16x32xbf16> to vector<32x32xbf16>
    %c1 = arith.constant 1 : index
    %c0_7 = arith.constant 0 : index
    %c0_8 = arith.constant 0 : index
    %12 = vector.load %arg2[%c1, %c0_7, %c0_8] : memref<5x32x160xbf16, #tpu.memory_space<vmem>>, vector<1x32x160xbf16>
    %13 = vector.shape_cast %12 : vector<1x32x160xbf16> to vector<32x160xbf16>
    %cst_9 = arith.constant dense<0.000000e+00> : vector<32x160xf32>
    %14 = tpu.matmul %11, %13, %cst_9 {dimension_numbers = #tpu.dot_dimension_numbers<[1], [0], [0], [1], [0, 0, 1, 1], [], []>} : vector<32x32xbf16>, vector<32x160xbf16>, vector<32x160xf32> -> vector<32x160xf32>
    %15 = arith.addf %9, %14 : vector<32x160xf32>
    %16 = vector.extract_strided_slice %0 {offsets = [0, 2, 0], sizes = [2, 16, 32], strides = [1, 1, 1]} : vector<2x20x32xbf16> to vector<2x16x32xbf16>
    %17 = vector.shape_cast %16 : vector<2x16x32xbf16> to vector<32x32xbf16>
    %c2 = arith.constant 2 : index
    %c0_10 = arith.constant 0 : index
    %c0_11 = arith.constant 0 : index
    %18 = vector.load %arg2[%c2, %c0_10, %c0_11] : memref<5x32x160xbf16, #tpu.memory_space<vmem>>, vector<1x32x160xbf16>
    %19 = vector.shape_cast %18 : vector<1x32x160xbf16> to vector<32x160xbf16>
    %cst_12 = arith.constant dense<0.000000e+00> : vector<32x160xf32>
    %20 = tpu.matmul %17, %19, %cst_12 {dimension_numbers = #tpu.dot_dimension_numbers<[1], [0], [0], [1], [0, 0, 1, 1], [], []>} : vector<32x32xbf16>, vector<32x160xbf16>, vector<32x160xf32> -> vector<32x160xf32>
    %21 = arith.addf %15, %20 : vector<32x160xf32>
    %22 = vector.extract_strided_slice %0 {offsets = [0, 3, 0], sizes = [2, 16, 32], strides = [1, 1, 1]} : vector<2x20x32xbf16> to vector<2x16x32xbf16>
    %23 = vector.shape_cast %22 : vector<2x16x32xbf16> to vector<32x32xbf16>
    %c3 = arith.constant 3 : index
    %c0_13 = arith.constant 0 : index
    %c0_14 = arith.constant 0 : index
    %24 = vector.load %arg2[%c3, %c0_13, %c0_14] : memref<5x32x160xbf16, #tpu.memory_space<vmem>>, vector<1x32x160xbf16>
    %25 = vector.shape_cast %24 : vector<1x32x160xbf16> to vector<32x160xbf16>
    %cst_15 = arith.constant dense<0.000000e+00> : vector<32x160xf32>
    %26 = tpu.matmul %23, %25, %cst_15 {dimension_numbers = #tpu.dot_dimension_numbers<[1], [0], [0], [1], [0, 0, 1, 1], [], []>} : vector<32x32xbf16>, vector<32x160xbf16>, vector<32x160xf32> -> vector<32x160xf32>
    %27 = arith.addf %21, %26 : vector<32x160xf32>
    %28 = vector.extract_strided_slice %0 {offsets = [0, 4, 0], sizes = [2, 16, 32], strides = [1, 1, 1]} : vector<2x20x32xbf16> to vector<2x16x32xbf16>
    %29 = vector.shape_cast %28 : vector<2x16x32xbf16> to vector<32x32xbf16>
    %c4 = arith.constant 4 : index
    %c0_16 = arith.constant 0 : index
    %c0_17 = arith.constant 0 : index
    %30 = vector.load %arg2[%c4, %c0_16, %c0_17] : memref<5x32x160xbf16, #tpu.memory_space<vmem>>, vector<1x32x160xbf16>
    %31 = vector.shape_cast %30 : vector<1x32x160xbf16> to vector<32x160xbf16>
    %cst_18 = arith.constant dense<0.000000e+00> : vector<32x160xf32>
    %32 = tpu.matmul %29, %31, %cst_18 {dimension_numbers = #tpu.dot_dimension_numbers<[1], [0], [0], [1], [0, 0, 1, 1], [], []>} : vector<32x32xbf16>, vector<32x160xbf16>, vector<32x160xf32> -> vector<32x160xf32>
    %33 = arith.addf %27, %32 : vector<32x160xf32>
    %34 = vector.shape_cast %33 : vector<32x160xf32> to vector<2x16x160xf32>
    %35 = vector.extract_strided_slice %34 {offsets = [0, 0, 0], sizes = [2, 16, 32], strides = [1, 1, 1]} : vector<2x16x160xf32> to vector<2x16x32xf32>
    %c0_19 = arith.constant 0 : index
    %c0_20 = arith.constant 0 : index
    %c0_21 = arith.constant 0 : index
    %36 = vector.load %arg4[%c0_19, %c0_20, %c0_21] : memref<2x70x32xf32, #tpu.memory_space<vmem>>, vector<2x16x32xf32>
    tpu.vector_store %arg4[%c0_19, %c0_20, %c0_21], %35 {strides = array<i32>} : memref<2x70x32xf32, #tpu.memory_space<vmem>>, vector<2x16x32xf32>,
    %37 = vector.extract_strided_slice %34 {offsets = [0, 0, 32], sizes = [2, 15, 32], strides = [1, 1, 1]} : vector<2x16x160xf32> to vector<2x15x32xf32>
    %c0_22 = arith.constant 0 : index
    %c16 = arith.constant 16 : index
    %c0_23 = arith.constant 0 : index
    %38 = vector.load %arg4[%c0_22, %c16, %c0_23] : memref<2x70x32xf32, #tpu.memory_space<vmem>>, vector<2x15x32xf32>
    tpu.vector_store %arg4[%c0_22, %c16, %c0_23], %37 {strides = array<i32>} : memref<2x70x32xf32, #tpu.memory_space<vmem>>, vector<2x15x32xf32>,
    %39 = vector.extract_strided_slice %34 {offsets = [0, 0, 64], sizes = [2, 14, 32], strides = [1, 1, 1]} : vector<2x16x160xf32> to vector<2x14x32xf32>
    %c0_24 = arith.constant 0 : index
    %c31 = arith.constant 31 : index
    %c0_25 = arith.constant 0 : index
    %40 = vector.load %arg4[%c0_24, %c31, %c0_25] : memref<2x70x32xf32, #tpu.memory_space<vmem>>, vector<2x14x32xf32>
    tpu.vector_store %arg4[%c0_24, %c31, %c0_25], %39 {strides = array<i32>} : memref<2x70x32xf32, #tpu.memory_space<vmem>>, vector<2x14x32xf32>,
    %41 = vector.extract_strided_slice %34 {offsets = [0, 0, 96], sizes = [2, 13, 32], strides = [1, 1, 1]} : vector<2x16x160xf32> to vector<2x13x32xf32>
    %c0_26 = arith.constant 0 : index
    %c45 = arith.constant 45 : index
    %c0_27 = arith.constant 0 : index
    %42 = vector.load %arg4[%c0_26, %c45, %c0_27] : memref<2x70x32xf32, #tpu.memory_space<vmem>>, vector<2x13x32xf32>
    tpu.vector_store %arg4[%c0_26, %c45, %c0_27], %41 {strides = array<i32>} : memref<2x70x32xf32, #tpu.memory_space<vmem>>, vector<2x13x32xf32>,
    %43 = vector.extract_strided_slice %34 {offsets = [0, 0, 128], sizes = [2, 12, 32], strides = [1, 1, 1]} : vector<2x16x160xf32> to vector<2x12x32xf32>
    %c0_28 = arith.constant 0 : index
    %c58 = arith.constant 58 : index
    %c0_29 = arith.constant 0 : index
    %44 = vector.load %arg4[%c0_28, %c58, %c0_29] : memref<2x70x32xf32, #tpu.memory_space<vmem>>, vector<2x12x32xf32>
    tpu.vector_store %arg4[%c0_28, %c58, %c0_29], %43 {strides = array<i32>} : memref<2x70x32xf32, #tpu.memory_space<vmem>>, vector<2x12x32xf32>,
    return
  }
  func.func @transform_0(%arg0: i32) -> (i32, i32, i32) {
    %c0_i32 = arith.constant 0 : i32
    %c0_i32_0 = arith.constant 0 : i32
    %c0_i32_1 = arith.constant 0 : i32
    return %arg0, %c0_i32, %c0_i32_0 : i32, i32, i32
  }
  func.func @transform_1(%arg0: i32) -> (i32, i32, i32) {
    %c0_i32 = arith.constant 0 : i32
    %c0_i32_0 = arith.constant 0 : i32
    %c0_i32_1 = arith.constant 0 : i32
    %c0_i32_2 = arith.constant 0 : i32
    return %c0_i32, %c0_i32_0, %c0_i32_1 : i32, i32, i32
  }
  func.func @transform_2(%arg0: i32) -> (i32, i32) {
    %c0_i32 = arith.constant 0 : i32
    %c0_i32_0 = arith.constant 0 : i32
    %c0_i32_1 = arith.constant 0 : i32
    return %c0_i32, %c0_i32_0 : i32, i32
  }
  func.func @transform_3(%arg0: i32) -> (i32, i32, i32) {
    %c0_i32 = arith.constant 0 : i32
    %c0_i32_0 = arith.constant 0 : i32
    %c0_i32_1 = arith.constant 0 : i32
    return %arg0, %c0_i32, %c0_i32_0 : i32, i32, i32
  }
}

</mosaic_0001>

<bundles_post_ra>
// kernel: tpu_custom_call.1
= control target key start
LH: loop header
LB: loop body
LE: loop exit
PB: predicated region body
PF: predicated region fallthrough
CT: control target
= control target key end

     0   :  { %8 = vsyncpa [#allocation3], 0  ;;  %s839_s12 = smov [#allocation2]   ;;  %s1109_s0 = inlined_call_operand.vmem [shape: bf16[2,20,32], index: 0, kind: input, shape index: {}]   ;;  %s1110_s1 = inlined_call_operand.hbm [shape: bf16[5,32,160], index: 1, kind: input, shape index: {}]   ;;  %s1111_s2 = inlined_call_operand.vmem [shape: f32[1,160], index: 2, kind: input, shape index: {}]   ;;  %s1112_s3 = inlined_call_operand.vmem [shape: f32[2,70,32], index: 3, kind: output, shape index: {}]  }
   0x1   :  { %s16_s13 = sshll.u32 %s839_s12, 4  ;;  %s17_s13 = int_to_ptr.vmem [resolvable:$true] %s16_s13 }
   0x2   :  { %s825_s14 = scalar_lea.vmem %s17_s13, 2560  ;;  %p830_p1 = scmp.lt.s32.totalorder %s17_s13, %s17_s13 }
   0x3   :  { %p826_p0 = scmp.ne.s32.totalorder %s17_s13, %s825_s14  ;;  %p831_p2 = scmp.lt.s32.totalorder %s825_s14, %s825_s14 }
   0x5   :  { %p832_p3 = por %p831_p2, %p830_p1 }
   0x7   :  { %p833_p4 = pnand %p832_p3, %p826_p0 }
   0x9   :  { %836 = shalt.err (!%p833_p4)
}
   0xa   :  { %s840_s15 = smov 128   ;;  %s841_s16 = smov 8  }
   0xb   :  { %22 = dma.hbm_to_vmem [thread:$0]  %s1110_s1, 2560, %s17_s13, [#allocation3], %s840_s15, %s840_s15, %s841_s16  }
   0xc   :  { %837 = dma.done.wait [#allocation3], 2560  }
   0xd   :  { %838 = vsyncadd [#allocation3], 4294964736  ;;  %v842_v0 = vmov 0   ;;  %v785_v1 = vld [vmem:[#allocation2 + $0x14] ss:$8 sps:$4 sm:$0xff]   ;;  %vm300_vm2 = vcmask 1042432  }
   0xe   :  { %120 = vmatprep.mubr.bf16.mxu0 %v842_v0  ;;  %130 = vmatprep.mubr.bf16.mxu1 %v842_v0  ;;  %v787_v2 = vld [vmem:[#allocation2 + $0x10] ss:$8 sps:$4 sm:$0xff]   ;;  %vm149_vm0 = vsmask.f32 3328  ;;  %v788_v3 = vld [vmem:[#allocation2 + $0x4] ss:$8 sps:$4 sm:$0xff]  }
   0xf   :  { %100 = vmatprep.subr.bf16.mxu0 %v785_v1  ;;  %774 = vmatprep.subr.bf16.mxu1 %v785_v1  ;;  %v874_v4 = vld [vmem:[%s1109_s0] sm:$0xf]  ;;  %vm150_vm1 = vsmask.f32 7440  ;;  %v879_v6 = vld [vmem:[%s1109_s0 + $0x4] sm:$0xf] }
  0x10   :  { %101 = vmatpush1.bf16.msra.mxu0 %v787_v2  ;;  %776 = vmatpush1.bf16.msra.mxu1 %v787_v2  ;;  %v790_v5 = vld [vmem:[#allocation2] ss:$8 sps:$4 sm:$0xff]   ;;  %v153_v7 = vshrl.u32 %v874_v4, 16  ;;  %v156_v8 = vshll.u32 %v874_v4, 16  ;;  %v886_v9 = vld [vmem:[%s1109_s0 + $0xc] sm:$0xf]  ;;  %v730_v12 = vcombine.low %v874_v4, %v879_v6  ;;  %vm920_vm6 = vmor %vm149_vm0, %vm150_vm1 }
  0x11   :  { %102 = vmatprep.subr.bf16.mxu0 %v788_v3  ;;  %775 = vmatprep.subr.bf16.mxu1 %v788_v3  ;;  %v891_v10 = vld [vmem:[%s1109_s0 + $0x10] sm:$0xf]  ;;  %vm301_vm3 = vcmask 1046532   ;;  %vm81_vm4 = vcmask 261120   ;;  %v166_v13 = vshrl.u32 %v879_v6, 16  ;;  %v162_v26 = vshll.u32 %v879_v6, 16 }
  0x12   :  { %v793_v11 = vld [vmem:[#allocation2 + $0x30] ss:$8 sps:$4 sm:$0xff]   ;;  %v731_v14 = vcombine.low %v886_v9, %v891_v10  ;;  %v795_v15 = vld [vmem:[#allocation2 + $0x34] ss:$8 sps:$4 sm:$0xff]   ;;  %v155_v18 = vrot.slane %v153_v7, 4  ;;  %v898_v19 = vrot.slane %v153_v7, 5  ;;  %vm902_vm5 = vmor %vm300_vm2, %vm301_vm3 }
  0x13   :  { %v796_v16 = vld [vmem:[#allocation2 + $0x50] ss:$8 sps:$4 sm:$0xff]   ;;  %v798_v17 = vld [vmem:[#allocation2 + $0x54] ss:$8 sps:$4 sm:$0xff]   ;;  %v801_v20 = vld [vmem:[#allocation2 + $0x24] ss:$8 sps:$4 sm:$0xff]  }
  0x14   :  { %103 = vmatpush1.bf16.msra.mxu0 %v790_v5  ;;  %777 = vmatpush1.bf16.msra.mxu1 %v790_v5  ;;  %v158_v21 = vrot.slane %v156_v8, 5  ;;  %v799_v23 = vld [vmem:[#allocation2 + $0x20] ss:$8 sps:$4 sm:$0xff]   ;;  %v804_v25 = vld [vmem:[#allocation2 + $0x44] ss:$8 sps:$4 sm:$0xff]   ;;  %v168_v29 = vrot.slane %v166_v13, 4 }
  0x15   :  { %249 = vmatprep.subr.bf16.mxu1 %v795_v15  ;;  %366 = vmatprep.subr.bf16.mxu0 %v798_v17  ;;  %v802_v24 = vld [vmem:[#allocation2 + $0x40] ss:$8 sps:$4 sm:$0xff]   ;;  %v746_v30 = vrot.slane %v874_v4, 9  ;;  %v305_v31 = vrot.slane %v879_v6, 5  ;;  %v916_v32 = vrot.slane %v156_v8, 6  ;;  %v164_v34 = vrot.slane %v162_v26, 5 }
  0x16   :  { %v912_v27 = vld [vmem:[%s1109_s0 + $0x8] sm:$0x3]  ;;  %v159_v28 = vor.u32 %v158_v21, %v155_v18  ;;  %v422_v37 = vrot.slane %v166_v13, 5  ;;  %v807_v41 = vld [vmem:[#allocation2 + $0x74] ss:$8 sps:$4 sm:$0xff]   ;;  %v423_v44 = vrot.slane %v162_v26, 6 }
  0x17   :  { %736 = vmatmul.mubr.msk.bf16.vlgmr.msra.gmra.mxu0 %vm81_vm4, %v730_v12  ;;  %737 = vmatmul.mubr.msk.bf16.vlgmr.msra.gmra.mxu1 %vm81_vm4, %v731_v14  ;;  %v172_v35 = vshll.u32 %v912_v27, 16  ;;  %v308_v36 = vrot.slane %v912_v27, 5  ;;  %v306_v39 = vsel %vm902_vm5, %v746_v30, %v305_v31  ;;  %v307_v40 = vrot.slane %v305_v31, 4  ;;  %v808_v45 = vld [vmem:[#allocation2 + $0x90] ss:$8 sps:$4 sm:$0xff]   ;;  %s843_s5 = smov 96  }
  0x18   :  { %250 = vmatpush1.bf16.msra.mxu1 %v793_v11  ;;  %367 = vmatpush1.bf16.msra.mxu0 %v796_v16  ;;  %v160_v38 = vrot.slane %v159_v28, 4  ;;  %v169_v42 = vor.u32 %v168_v29, %v164_v34  ;;  %v177_v46 = vshrl.u32 %v886_v9, 16  ;;  %v810_v49 = vld [vmem:[#allocation2 + $0x94] ss:$8 sps:$4 sm:$0xff]   ;;  %v180_v51 = vshll.u32 %v886_v9, 16  ;;  %s844_s10 = smov 64  }
  0x19   :  { %251 = vmatprep.subr.bf16.mxu1 %v801_v20  ;;  %368 = vmatprep.subr.bf16.mxu0 %v804_v25  ;;  %v174_v43 = vrot.slane %v172_v35, 5  ;;  %v309_v48 = vsel %vm902_vm5, %v307_v40, %v308_v36  ;;  %v938_v50 = vld [vmem:[%s1109_s0 + $0x14] sm:$0x3]  ;;  %v186_v52 = vshll.u32 %v891_v10, 16  ;;  %vm415_vm7 = vsmask.f32 2304 }
  0x1a   :  { %269 = vmatprep.mubr.bf16.mxu1 %v842_v0  ;;  %386 = vmatprep.mubr.bf16.mxu0 %v842_v0  ;;  %v165_v47 = vsel %vm920_vm6, %v160_v38, %v164_v34  ;;  %vm416_vm8 = vsmask.f32 6416  ;;  %v170_v53 = vrot.slane %v169_v42, 4  ;;  %v748_v54 = vcombine.low %v306_v39, %v309_v48  ;;  %v805_v62 = vld [vmem:[#allocation2 + $0x70] ss:$8 sps:$4 sm:$0xff]   ;;  %s845_s15 = smov 32  }
  0x1b   :  { %v179_v55 = vrot.slane %v177_v46, 4  ;;  %v190_v56 = vshrl.u32 %v891_v10, 16  ;;  %v182_v57 = vrot.slane %v180_v51, 5  ;;  %v188_v58 = vrot.slane %v186_v52, 5  ;;  %v813_v8 = vld [vmem:[#allocation2 + $0x64] ss:$8 sps:$4 sm:$0xff]   ;;  %vm982_vm12 = vmor %vm415_vm7, %vm416_vm8 }
  0x1c   :  { %252 = vmatpush1.bf16.msra.mxu1 %v799_v23  ;;  %369 = vmatpush1.bf16.msra.mxu0 %v802_v24  ;;  %v196_v59 = vshll.u32 %v938_v50, 16  ;;  %v747_v60 = vrot.slane %v886_v9, 9  ;;  %v175_v61 = vsel %vm920_vm6, %v170_v53, %v174_v43  ;;  %v312_v1 = vrot.slane %v891_v10, 5  ;;  %v816_v11 = vld [vmem:[#allocation2 + $0x84] ss:$8 sps:$4 sm:$0xff]  }
  0x1d   :  { %497 = vmatprep.subr.bf16.mxu1 %v807_v41  ;;  %612 = vmatprep.subr.bf16.mxu0 %v810_v49  ;;  %v192_v63 = vrot.slane %v190_v56, 4  ;;  %v315_v2 = vrot.slane %v938_v50, 5  ;;  %v551_v3 = vrot.slane %v879_v6, 6  ;;  %v738_v5 = vcombine.low %v165_v47, %v175_v61  ;;  %v814_v16 = vld [vmem:[#allocation2 + $0x80] ss:$8 sps:$4 sm:$0xff]  }
  0x1e   :  { %v183_v7 = vor.u32 %v182_v57, %v179_v55  ;;  %v420_v12 = vor.u32 %v916_v32, %v898_v19  ;;  %v198_v14 = vrot.slane %v196_v59, 5  ;;  %v313_v15 = vsel %vm902_vm5, %v747_v60, %v312_v1  ;;  %v811_v24 = vld [vmem:[#allocation2 + $0x60] ss:$8 sps:$4 sm:$0xff]  }
  0x1f   :  { %754 = vmatmul.mubr.msk.bf16.vlgmr.msra.gmra.mxu0 %vm81_vm4, %v748_v54  ;;  %v193_v13 = vor.u32 %v192_v63, %v188_v58  ;;  %v314_v6 = vrot.slane %v312_v1, 4  ;;  %744 = vmatmul.mubr.msk.bf16.vlgmr.msra.gmra.mxu1 %vm81_vm4, %v738_v5  ;;  %v424_v18 = vor.u32 %v423_v44, %v422_v37  ;;  %v427_v20 = vshrl.u32 %v912_v27, 16 }
  0x20   :  { %613 = vmatpush1.bf16.msra.mxu0 %v808_v45  ;;  %396 = vmatprep.mubr.bf16.mxu0 %v842_v0  ;;  %v184_v17 = vrot.slane %v183_v7, 4  ;;  %vm546_vm9 = vcmask 1041408   ;;  %v430_v19 = vrot.slane %v172_v35, 6  ;;  %vm547_vm10 = vcmask 1045508  }
  0x21   :  { %614 = vmatprep.subr.bf16.mxu0 %v816_v11  ;;  %498 = vmatpush1.bf16.msra.mxu1 %v805_v62  ;;  %v194_v21 = vrot.slane %v193_v13, 4  ;;  %v316_v23 = vsel %vm902_vm5, %v314_v6, %v315_v2  ;;  %v764_v25 = vrot.slane %v874_v4, 10  ;;  %v429_v29 = vrot.slane %v427_v20, 5  ;;  %vm974_vm11 = vmor %vm546_vm9, %vm547_vm10 }
  0x22   :  { %279 = vmatprep.mubr.bf16.mxu1 %v842_v0  ;;  %v189_v26 = vsel %vm920_vm6, %v184_v17, %v188_v58  ;;  %v749_v28 = vcombine.low %v313_v15, %v316_v23  ;;  %499 = vmatprep.subr.bf16.mxu1 %v813_v8  ;;  %v553_v30 = vrot.slane %v551_v3, 4  ;;  %v421_v32 = vrot.slane %v420_v12, 4 }
  0x23   :  { %v199_v31 = vsel %vm920_vm6, %v194_v21, %v198_v14  ;;  %v554_v34 = vrot.slane %v912_v27, 6  ;;  %v426_v35 = vrot.slane %v424_v18, 4  ;;  %v433_v4 = vrot.slane %v177_v46, 5 }
  0x24   :  { %615 = vmatpush1.bf16.msra.mxu0 %v814_v16  ;;  %v739_v22 = vcombine.low %v189_v26, %v199_v31  ;;  %v434_v37 = vrot.slane %v180_v51, 6  ;;  %v431_v38 = vor.u32 %v430_v19, %v429_v29  ;;  %v437_v27 = vrot.slane %v190_v56, 5 }
  0x25   :  { %500 = vmatpush1.bf16.msra.mxu1 %v811_v24  ;;  %v438_v39 = vrot.slane %v186_v52, 6  ;;  %v442_v40 = vshrl.u32 %v938_v50, 16  ;;  %v552_v41 = vsel %vm974_vm11, %v764_v25, %v551_v3  ;;  %v555_v42 = vsel %vm974_vm11, %v553_v30, %v554_v34 }
  0x26   :  { %v558_v43 = vrot.slane %v891_v10, 6  ;;  %v425_v44 = vsel %vm982_vm12, %v421_v32, %v424_v18  ;;  %v435_v45 = vor.u32 %v434_v37, %v433_v4  ;;  %v432_v46 = vsel %vm982_vm12, %v426_v35, %v431_v38  ;;  %v35_v18 = vld [vmem:[%s1111_s2] sm:$0x3] }
  0x27   :  { %755 = vmatmul.mubr.msk.bf16.gmra.mxu0 %vm81_vm4, %v749_v28  ;;  %745 = vmatmul.mubr.msk.bf16.gmra.mxu1 %vm81_vm4, %v739_v22  ;;  %v439_v47 = vor.u32 %v438_v39, %v437_v27  ;;  %v444_v48 = vrot.slane %v442_v40, 5  ;;  %v445_v49 = vrot.slane %v196_v59, 6  ;;  %v766_v51 = vcombine.low %v552_v41, %v555_v42 }
  0x28   :  { %632 = vmatprep.mubr.bf16.mxu0 %v842_v0  ;;  %517 = vmatprep.mubr.bf16.mxu1 %v842_v0  ;;  %v765_v52 = vrot.slane %v886_v9, 10  ;;  %v560_v10 = vrot.slane %v558_v43, 4  ;;  %v561_v53 = vrot.slane %v938_v50, 6  ;;  %v756_v54 = vcombine.low %v425_v44, %v432_v46 }
  0x29   :  { %v436_v55 = vrot.slane %v435_v45, 4  ;;  %v441_v56 = vrot.slane %v439_v47, 4  ;;  %v446_v57 = vor.u32 %v445_v49, %v444_v48  ;;  %v37_v7 = vlaneseq }
  0x2a   :  { %v559_v58 = vsel %vm974_vm11, %v765_v52, %v558_v43  ;;  %v562_v59 = vsel %vm974_vm11, %v560_v10, %v561_v53  ;;  %vm721_vm13 = vcmask 257024   ;;  %vm699_vm14 = vcmask 259072  }
  0x2b   :  { %v440_v9 = vsel %vm982_vm12, %v436_v55, %v439_v47  ;;  %v447_v50 = vsel %vm982_vm12, %v441_v56, %v446_v57  ;;  %v767_v60 = vcombine.low %v559_v58, %v562_v59  ;;  %v38_v12 = vshrl.u32 %v37_v7, 7 }
  0x2c   :  { %v757_v61 = vcombine.low %v440_v9, %v447_v50  ;;  %vm716_vm15 = vcmask 258048   ;;  %vm682_vm0 = vcmask 260096  }
  0x2d   :  { %v39_v16 = vsub.s32 0, %v38_v12  ;;  %v43_v17 = vsub.s32 1, %v38_v12 }
  0x2f   :  { %772 = vmatmul.mubr.msk.bf16.vlgmr.msra.gmra.mxu0 %vm81_vm4, %v766_v51  ;;  %762 = vmatmul.mubr.msk.bf16.vlgmr.msra.gmra.mxu1 %vm81_vm4, %v756_v54  ;;  %v40_v24 = vrot.slane %v35_v18, %v39_v16  ;;  %v44_v25 = vrot.slane %v35_v18, %v43_v17 }
  0x30   :  { %642 = vmatprep.mubr.bf16.mxu0 %v842_v0  ;;  %527 = vmatprep.mubr.bf16.mxu1 %v842_v0 }
  0x37   :  { %773 = vmatmul.mubr.msk.bf16.gmra.mxu0 %vm81_vm4, %v767_v60  ;;  %763 = vmatmul.mubr.msk.bf16.gmra.mxu1 %vm81_vm4, %v757_v61 }
  0xd7   :  { %v122_v62 = vpop.f32.mrf.mxu0  ;;  %v132_v63 = vpop.f32.mrf.mxu1 }
  0xd8   :  { %v141_v29 = vadd.f32 %v122_v62, %v40_v24  ;;  %v145_v42 = vadd.f32 %v132_v63, %v40_v24 }
  0xd9   :  { %v124_v1 = vpop.f32.mrf.mxu0  ;;  %v134_v2 = vpop.f32.mrf.mxu1 }
  0xda   :  { %v142_v32 = vadd.f32 %v124_v1, %v44_v25  ;;  %v146_v46 = vadd.f32 %v134_v2, %v44_v25 }
  0xdb   :  { %v126_v3 = vpop.f32.mrf.mxu0  ;;  %v136_v5 = vpop.f32.mrf.mxu1 }
  0xdc   :  { %v143_v36 = vadd.f32 %v126_v3, %v40_v24  ;;  %v147_v56 = vadd.f32 %v136_v5, %v40_v24 }
  0xdd   :  { %v128_v0 = vpop.f32.mrf.mxu0  ;;  %v138_v8 = vpop.f32.mrf.mxu1 }
  0xde   :  { %v144_v38 = vadd.f32 %v128_v0, %v44_v25  ;;  %v148_v9 = vadd.f32 %v138_v8, %v44_v25 }
  0xdf   :  { %v388_v11 = vpop.f32.mrf.mxu0  ;;  %v271_v13 = vpop.f32.mrf.mxu1 }
  0xe0   :  { %v290_v34 = vadd.f32 %v271_v13, %v141_v29 }
  0xe1   :  { %v390_v14 = vpop.f32.mrf.mxu0  ;;  %v273_v15 = vpop.f32.mrf.mxu1 }
  0xe2   :  { %v291_v4 = vadd.f32 %v273_v15, %v142_v32  ;;  %v407_v27 = vadd.f32 %v388_v11, %v290_v34 }
  0xe3   :  { %v392_v6 = vpop.f32.mrf.mxu0  ;;  %v275_v20 = vpop.f32.mrf.mxu1 }
  0xe4   :  { %v292_v39 = vadd.f32 %v275_v20, %v143_v36  ;;  %v408_v43 = vadd.f32 %v390_v14, %v291_v4 }
  0xe5   :  { %v394_v19 = vpop.f32.mrf.mxu0  ;;  %v277_v21 = vpop.f32.mrf.mxu1 }
  0xe6   :  { %v293_v44 = vadd.f32 %v277_v21, %v144_v38  ;;  %v409_v49 = vadd.f32 %v392_v6, %v292_v39 }
  0xe7   :  { %v398_v23 = vpop.f32.mrf.mxu0  ;;  %v281_v26 = vpop.f32.mrf.mxu1 }
  0xe8   :  { %v294_v51 = vadd.f32 %v281_v26, %v145_v42  ;;  %v410_v57 = vadd.f32 %v394_v19, %v293_v44 }
  0xe9   :  { %v400_v28 = vpop.f32.mrf.mxu0  ;;  %v283_v30 = vpop.f32.mrf.mxu1 }
  0xea   :  { %v295_v53 = vadd.f32 %v283_v30, %v146_v46  ;;  %v411_v61 = vadd.f32 %v398_v23, %v294_v51 }
  0xeb   :  { %v402_v31 = vpop.f32.mrf.mxu0  ;;  %v285_v22 = vpop.f32.mrf.mxu1 }
  0xec   :  { %v296_v62 = vadd.f32 %v285_v22, %v147_v56  ;;  %v412_v2 = vadd.f32 %v400_v28, %v295_v53 }
  0xed   :  { %v404_v35 = vpop.f32.mrf.mxu0  ;;  %v287_v37 = vpop.f32.mrf.mxu1 }
  0xee   :  { %v297_v7 = vadd.f32 %v287_v37, %v148_v9  ;;  %v413_v12 = vadd.f32 %v402_v31, %v296_v62 }
  0xef   :  { %v634_v33 = vpop.f32.mrf.mxu0  ;;  %v519_v40 = vpop.f32.mrf.mxu1 }
  0xf0   :  { %v538_v45 = vadd.f32 %v519_v40, %v407_v27  ;;  %v414_v16 = vadd.f32 %v404_v35, %v297_v7 }
  0xf1   :  { %v636_v41 = vpop.f32.mrf.mxu0  ;;  %v521_v47 = vpop.f32.mrf.mxu1 }
  0xf2   :  { %v653_v52 = vadd.f32 %v634_v33, %v538_v45  ;;  %v539_v10 = vadd.f32 %v521_v47, %v408_v43 }
  0xf3   :  { %v638_v48 = vpop.f32.mrf.mxu0  ;;  %v523_v54 = vpop.f32.mrf.mxu1 }
  0xf4   :  { %661 = vst.msk [vmem:[%s1112_s3] sm:$0xff] %vm81_vm4, %v653_v52  ;;  %v654_v58 = vadd.f32 %v636_v41, %v539_v10  ;;  %v540_v59 = vadd.f32 %v523_v54, %v409_v49  ;;  %669 = vrot.lane.b32.xlu0 %v653_v52, %s843_s5 }
  0xf5   :  { %v640_v55 = vpop.f32.mrf.mxu0  ;;  %v525_v50 = vpop.f32.mrf.mxu1 }
  0xf6   :  { %720 = vst.msk [vmem:[%s1112_s3 + $0x3a] sm:$0xff] %vm81_vm4, %v654_v58  ;;  %v655_v63 = vadd.f32 %v638_v48, %v540_v59  ;;  %v541_v1 = vadd.f32 %v525_v50, %v410_v57 }
  0xf7   :  { %v644_v60 = vpop.f32.mrf.mxu0  ;;  %v529_v3 = vpop.f32.mrf.mxu1 }
  0xf8   :  { %662 = vst.msk [vmem:[%s1112_s3 + $0x8] sm:$0xff] %vm81_vm4, %v655_v63  ;;  %v656_v0 = vadd.f32 %v640_v55, %v541_v1  ;;  %v542_v8 = vadd.f32 %v529_v3, %v411_v61  ;;  %686 = vrot.lane.b32.xlu0 %v653_v52, %s844_s10  ;;  %688 = vrot.lane.b32.xlu1 %v655_v63, %s844_s10 }
  0xf9   :  { %v646_v5 = vpop.f32.mrf.mxu0  ;;  %v531_v11 = vpop.f32.mrf.mxu1 }
  0xfa   :  { %722 = vst.msk [vmem:[%s1112_s3 + $0x42] sm:$0xf] %vm721_vm13, %v656_v0  ;;  %v657_v13 = vadd.f32 %v644_v60, %v542_v8  ;;  %v543_v14 = vadd.f32 %v531_v11, %v412_v2 }
  0xfb   :  { %v533_v15 = vpop.f32.mrf.mxu1  ;;  %v648_v6 = vpop.f32.mrf.mxu0 }
  0xfc   :  { %663 = vst.msk [vmem:[%s1112_s3 + $0x48] sm:$0xff] %vm81_vm4, %v657_v13  ;;  %v658_v17 = vadd.f32 %v646_v5, %v543_v14  ;;  %v544_v18 = vadd.f32 %v533_v15, %v413_v12  ;;  %703 = vrot.lane.b32.xlu0 %v653_v52, %s845_s15  ;;  %705 = vrot.lane.b32.xlu1 %v655_v63, %s845_s15 }
  0xfd   :  { %v535_v20 = vpop.f32.mrf.mxu1  ;;  %v650_v23 = vpop.f32.mrf.mxu0 }
  0xfe   :  { %723 = vst.msk [vmem:[%s1112_s3 + $0x82] sm:$0xff] %vm81_vm4, %v658_v17  ;;  %v659_v19 = vadd.f32 %v648_v6, %v544_v18  ;;  %v545_v21 = vadd.f32 %v535_v20, %v414_v16 }
 0x100   :  { %664 = vst.msk [vmem:[%s1112_s3 + $0x50] sm:$0xff] %vm81_vm4, %v659_v19  ;;  %v660_v24 = vadd.f32 %v650_v23, %v545_v21  ;;  %671 = vrot.lane.b32.xlu0 %v655_v63, %s843_s5  ;;  %673 = vrot.lane.b32.xlu1 %v657_v13, %s843_s5 }
 0x102   :  { %724 = vst.msk [vmem:[%s1112_s3 + $0x8a] sm:$0xf] %vm721_vm13, %v660_v24 }
 0x104   :  { %690 = vrot.lane.b32.xlu0 %v657_v13, %s844_s10  ;;  %675 = vrot.lane.b32.xlu1 %v659_v19, %s843_s5 }
 0x108   :  { %707 = vrot.lane.b32.xlu0 %v657_v13, %s845_s15  ;;  %692 = vrot.lane.b32.xlu1 %v659_v19, %s844_s10 }
 0x10c   :  { %709 = vrot.lane.b32.xlu1 %v659_v19, %s845_s15 }
 0x166   :  { %v670_v25 = vpop.permute.xlu0 %669 }
 0x167   :  { %681 = vst.msk [vmem:[%s1112_s3 + $0x10] sm:$0xff] %vm81_vm4, %v670_v25 }
 0x16a   :  { %v687_v26 = vpop.permute.xlu0 %686  ;;  %v689_v28 = vpop.permute.xlu1 %688 }
 0x16b   :  { %698 = vst.msk [vmem:[%s1112_s3 + $0x1f] sm:$0xff] %vm81_vm4, %v687_v26 }
 0x16c   :  { %700 = vst.msk [vmem:[%s1112_s3 + $0x27] sm:$0x3f] %vm699_vm14, %v689_v28 }
 0x16e   :  { %v704_v29 = vpop.permute.xlu0 %703  ;;  %v706_v30 = vpop.permute.xlu1 %705 }
 0x16f   :  { %715 = vst.msk [vmem:[%s1112_s3 + $0x2d] sm:$0xff] %vm81_vm4, %v704_v29 }
 0x170   :  { %717 = vst.msk [vmem:[%s1112_s3 + $0x35] sm:$0x1f] %vm716_vm15, %v706_v30 }
 0x172   :  { %v672_v31 = vpop.permute.xlu0 %671  ;;  %v674_v32 = vpop.permute.xlu1 %673 }
 0x173   :  { %683 = vst.msk [vmem:[%s1112_s3 + $0x18] sm:$0x7f] %vm682_vm0, %v672_v31 }
 0x174   :  { %684 = vst.msk [vmem:[%s1112_s3 + $0x58] sm:$0xff] %vm81_vm4, %v674_v32 }
 0x176   :  { %v691_v34 = vpop.permute.xlu0 %690  ;;  %v676_v22 = vpop.permute.xlu1 %675 }
 0x177   :  { %701 = vst.msk [vmem:[%s1112_s3 + $0x67] sm:$0xff] %vm81_vm4, %v691_v34 }
 0x178   :  { %685 = vst.msk [vmem:[%s1112_s3 + $0x60] sm:$0x7f] %vm682_vm0, %v676_v22 }
 0x17a   :  { %v708_v35 = vpop.permute.xlu0 %707  ;;  %v693_v36 = vpop.permute.xlu1 %692 }
 0x17b   :  { %718 = vst.msk [vmem:[%s1112_s3 + $0x75] sm:$0xff] %vm81_vm4, %v708_v35 }
 0x17c   :  { %702 = vst.msk [vmem:[%s1112_s3 + $0x6f] sm:$0x3f] %vm699_vm14, %v693_v36 }
 0x17e   :  { %v710_v4 = vpop.permute.xlu1 %709 }
 0x17f   :  { %719 = vst.msk [vmem:[%s1112_s3 + $0x7d] sm:$0x1f] %vm716_vm15, %v710_v4 }
 0x180   :  { %729 = vsyncpa [#allocation3], 1 }

</bundles_post_ra>
